<compile_context>
chip_gen: v6e
topology: v6e:2x2x1
jax: 0.10.0
libtpu: 0.0.40
codegen_flags: <defaults>
</compile_context>

<pallas_src>
import functools

import jax
import jax.numpy as jnp
from jax.experimental import pallas as pl
from jax.experimental.pallas import tpu as pltpu

LANES = 128
MAX_TILE_ROWS = 2048      # 2048 x 128 f32 = 1 MiB per input block
NUM_CHUNKS = 2            # leading "parallel" grid axis (v7x has 2 TCs)


def _l1_sum_single_kernel(infer_ref, gt_ref, out_ref):
    """Whole-array-in-one-block case: direct reduction, no scratch needed."""
    a = infer_ref[...].astype(jnp.float32)
    b = gt_ref[...].astype(jnp.float32)
    out_ref[0, 0] = jnp.sum(jnp.abs(a - b))


def _l1_partial_sum_kernel(infer_ref, gt_ref, out_ref, acc_ref, *,
                           tile_rows, inner_steps, valid_rows):
    """Accumulate sum(|infer - gt|) for one chunk of the row range.

    acc_ref: (8, 128) f32 VMEM accumulator (one vreg), persists across the
             inner ("arbitrary") grid axis.
    out_ref: (1, 1) f32 SMEM partial sum for this chunk, written once.
    valid_rows: total valid row count when masking is needed (partial last
                block and/or clamped duplicate trailing blocks), else None.
    """
    c = pl.program_id(0)
    s = pl.program_id(1)

    @pl.when(s == 0)
    def _():
        acc_ref[...] = jnp.zeros_like(acc_ref)

    a = infer_ref[...].astype(jnp.float32)
    b = gt_ref[...].astype(jnp.float32)
    diff = jnp.abs(a - b)

    if valid_rows is not None:
        # Rows past the array extent (edge-padded garbage, or a clamped
        # duplicate of the last block) must contribute zero.
        start = (c * inner_steps + s) * tile_rows
        row_ids = start + jax.lax.broadcasted_iota(jnp.int32, diff.shape, 0)
        diff = jnp.where(row_ids < valid_rows, diff, 0.0)

    # Row-group reduction: (tile_rows, 128) -> (8, 128).  Pure vreg adds on
    # the VPU (the reshape is layout-preserving); hides under the next DMA.
    acc_ref[...] += jnp.sum(diff.reshape(tile_rows // 8, 8, LANES), axis=0)

    @pl.when(s == inner_steps - 1)
    def _():
        # Single cross-lane/cross-sublane reduction + scalar store, per chunk.
        out_ref[0, 0] = jnp.sum(acc_ref[...])


def _l1_sum_2d(infer2d, gt2d):
    """Pallas reduction: sum(|infer2d - gt2d|) for a (rows, 128) slab."""
    rows, lanes = infer2d.shape
    assert lanes == LANES

    bytes_in = (infer2d.size * infer2d.dtype.itemsize
                + gt2d.size * gt2d.dtype.itemsize)
    cost = pl.CostEstimate(
        flops=3 * infer2d.size,          # sub + abs + add per element
        transcendentals=0,
        bytes_accessed=bytes_in + 4)     # two inputs read + scalar out

    if rows <= MAX_TILE_ROWS:
        # Single full-extent block (any row count is legal when the block
        # shape equals the array shape).
        out = pl.pallas_call(
            _l1_sum_single_kernel,
            out_shape=jax.ShapeDtypeStruct((1, 1), jnp.float32),
            grid_spec=pltpu.PrefetchScalarGridSpec(
                num_scalar_prefetch=0,
                grid=(1,),
                in_specs=[
                    pl.BlockSpec((rows, LANES), lambda i: (0, 0)),
                    pl.BlockSpec((rows, LANES), lambda i: (0, 0)),
                ],
                out_specs=pl.BlockSpec(
                    (1, 1), lambda i: (0, 0), memory_space=pltpu.SMEM),
            ),
            compiler_params=pltpu.CompilerParams(
                dimension_semantics=("arbitrary",)),
            cost_estimate=cost,
        )(infer2d, gt2d)
        return out[0, 0]

    tile_rows = MAX_TILE_ROWS                    # multiple of 8
    total_blocks = pl.cdiv(rows, tile_rows)      # >= 2 here
    num_chunks = NUM_CHUNKS if total_blocks >= NUM_CHUNKS else 1
    inner_steps = pl.cdiv(total_blocks, num_chunks)
    padded_rows = num_chunks * inner_steps * tile_rows
    needs_mask = padded_rows != rows
    valid_rows = rows if needs_mask else None
    last_block = total_blocks - 1

    def in_map(c, s):
        blk = c * inner_steps + s
        if needs_mask:
            # Trailing blocks past the array are clamped onto the last real
            # block (no OOB DMA); their contribution is masked to zero.
            blk = jnp.minimum(blk, last_block)
        return (blk, 0)

    kernel = functools.partial(
        _l1_partial_sum_kernel, tile_rows=tile_rows,
        inner_steps=inner_steps, valid_rows=valid_rows)

    out = pl.pallas_call(
        kernel,
        out_shape=jax.ShapeDtypeStruct((num_chunks, 1), jnp.float32),
        grid_spec=pltpu.PrefetchScalarGridSpec(
            num_scalar_prefetch=0,
            grid=(num_chunks, inner_steps),
            in_specs=[
                pl.BlockSpec((tile_rows, LANES), in_map),
                pl.BlockSpec((tile_rows, LANES), in_map),
            ],
            out_specs=pl.BlockSpec(
                (1, 1), lambda c, s: (c, 0), memory_space=pltpu.SMEM),
            scratch_shapes=[pltpu.VMEM((8, LANES), jnp.float32)],
        ),
        compiler_params=pltpu.CompilerParams(
            dimension_semantics=("parallel", "arbitrary")),
        cost_estimate=cost,
    )(infer2d, gt2d)
    return jnp.sum(out)


def cal_pixel_loss(infer, gt):
    """Mean absolute error, computed with a Pallas TPU reduction kernel."""
    assert infer.shape == gt.shape, "infer/gt shape mismatch"
    n = infer.size

    flat_i = infer.reshape(-1)
    flat_g = gt.reshape(-1)

    tail = n % LANES
    main_n = n - tail

    total = jnp.float32(0.0)
    if main_n > 0:
        if tail > 0:
            main_i = flat_i[:main_n].reshape(main_n // LANES, LANES)
            main_g = flat_g[:main_n].reshape(main_n // LANES, LANES)
        else:
            main_i = flat_i.reshape(main_n // LANES, LANES)
            main_g = flat_g.reshape(main_n // LANES, LANES)
        total = total + _l1_sum_2d(main_i, main_g)
    if tail > 0:
        # Tiny (<128-element) remainder: plain JAX, avoids any full-array pad.
        ti = flat_i[main_n:].astype(jnp.float32)
        tg = flat_g[main_n:].astype(jnp.float32)
        total = total + jnp.sum(jnp.abs(ti - tg))

    return total / jnp.float32(n)


if __name__ == "__main__":
    key = jax.random.PRNGKey(0)

    # Primary small NCHW case consistent with the module (single-block path).
    k1, k2, k3, k4, k5, k6 = jax.random.split(key, 6)
    infer = jax.random.normal(k1, (2, 4, 16, 16), dtype=jnp.float32)
    gt = jax.random.normal(k2, (2, 4, 16, 16), dtype=jnp.float32)
    loss = cal_pixel_loss(infer, gt)
    jax.block_until_ready(loss)
    ref = jnp.mean(jnp.abs(infer - gt))
    assert jnp.allclose(loss, ref, rtol=1e-4, atol=1e-6), (loss, ref)

    # Non-128-divisible element count -> exercises the JAX tail path.
    infer2 = jax.random.normal(k3, (3, 5, 17, 19), dtype=jnp.float32)
    gt2 = jax.random.normal(k4, (3, 5, 17, 19), dtype=jnp.float32)
    loss2 = cal_pixel_loss(infer2, gt2)
    jax.block_until_ready(loss2)
    ref2 = jnp.mean(jnp.abs(infer2 - gt2))
    assert jnp.allclose(loss2, ref2, rtol=1e-4, atol=1e-6), (loss2, ref2)

    # Moderate image -> exercises the 2-D (parallel, arbitrary) grid with a
    # partial last block, index clamping, and in-kernel masking.
    infer3 = jax.random.normal(k5, (1, 3, 430, 430), dtype=jnp.float32)
    gt3 = jax.random.normal(k6, (1, 3, 430, 430), dtype=jnp.float32)
    loss3 = cal_pixel_loss(infer3, gt3)
    jax.block_until_ready(loss3)
    ref3 = jnp.mean(jnp.abs(infer3 - gt3))
    assert jnp.allclose(loss3, ref3, rtol=1e-4, atol=1e-6), (loss3, ref3)

    print("KERNEL_OK")
</pallas_src>

<mosaic_0001>
module attributes {stable_mosaic.version = 11 : i64} {
  func.func @_l1_sum_single_kernel(%arg0: i32, %arg1: memref<16x128xf32, #tpu.memory_space<vmem>>, %arg2: memref<16x128xf32, #tpu.memory_space<vmem>>, %arg3: memref<1x1xf32, #tpu.memory_space<smem>>) attributes {dimension_semantics = [#tpu.dimension_semantics<arbitrary>], iteration_bounds = array<i64: 1>, scalar_prefetch = 0 : i64, scratch_operands = 0 : i64, tpu.core_type = #tpu.core_type<tc>, window_params = [{pipeline_mode = #tpu.pipeline_mode<synchronous>, transform_indices = @transform_0, window_bounds = array<i64: 16, 128>}, {pipeline_mode = #tpu.pipeline_mode<synchronous>, transform_indices = @transform_1, window_bounds = array<i64: 16, 128>}, {transform_indices = @transform_2, window_bounds = array<i64: 1, 1>}]} {
    %c0 = arith.constant 0 : index
    %c0_0 = arith.constant 0 : index
    %0 = vector.load %arg1[%c0, %c0_0] : memref<16x128xf32, #tpu.memory_space<vmem>>, vector<16x128xf32>
    %c0_1 = arith.constant 0 : index
    %c0_2 = arith.constant 0 : index
    %1 = vector.load %arg2[%c0_1, %c0_2] : memref<16x128xf32, #tpu.memory_space<vmem>>, vector<16x128xf32>
    %2 = arith.subf %0, %1 : vector<16x128xf32>
    %3 = math.absf %2 : vector<16x128xf32>
    %4 = vector.shape_cast %3 : vector<16x128xf32> to vector<1x16x128xf32>
    %cst = arith.constant dense<0.000000e+00> : vector<1xf32>
    %5 = vector.multi_reduction <add>, %4, %cst [1, 2] : vector<1x16x128xf32> to vector<1xf32>
    %6 = vector.shape_cast %5 : vector<1xf32> to vector<1x1x1xf32>
    %7 = vector.extract %6[0, 0, 0] : f32 from vector<1x1x1xf32>
    %c0_3 = arith.constant 0 : index
    %c0_4 = arith.constant 0 : index
    %8 = memref.load %arg3[%c0_3, %c0_4] : memref<1x1xf32, #tpu.memory_space<smem>>
    memref.store %7, %arg3[%c0_3, %c0_4] : memref<1x1xf32, #tpu.memory_space<smem>>
    return
  }
  func.func @transform_0(%arg0: i32) -> (i32, i32) {
    %c0_i32 = arith.constant 0 : i32
    %c0_i32_0 = arith.constant 0 : i32
    %c0_i32_1 = arith.constant 0 : i32
    return %c0_i32, %c0_i32_0 : i32, i32
  }
  func.func @transform_1(%arg0: i32) -> (i32, i32) {
    %c0_i32 = arith.constant 0 : i32
    %c0_i32_0 = arith.constant 0 : i32
    %c0_i32_1 = arith.constant 0 : i32
    return %c0_i32, %c0_i32_0 : i32, i32
  }
  func.func @transform_2(%arg0: i32) -> (i32, i32) {
    %c0_i32 = arith.constant 0 : i32
    %c0_i32_0 = arith.constant 0 : i32
    %c0_i32_1 = arith.constant 0 : i32
    return %c0_i32, %c0_i32_0 : i32, i32
  }
}

</mosaic_0001>

<bundles_post_ra>
// kernel: tpu_custom_call.1
= control target key start
LH: loop header
LB: loop body
LE: loop exit
PB: predicated region body
PF: predicated region fallthrough
CT: control target
= control target key end

     0   :  { %7 = vsyncpa [#allocation3], 0  ;;  %s165_s0 = inlined_call_operand.hbm [shape: f32[16,128], index: 0, kind: input, shape index: {}]   ;;  %s166_s1 = inlined_call_operand.hbm [shape: f32[16,128], index: 1, kind: input, shape index: {}]   ;;  %s167_s2 = inlined_call_operand.hbm [shape: f32[1,1], index: 2, kind: output, shape index: {}]  }
   0x1   :  { %8 = vsyncpa [#allocation6], 0 }
   0x2   :  { %9 = vsyncpa [#allocation4], 0  ;;  %s136_s9 = smov [#allocation2]  }
   0x3   :  { %s15_s10 = sshll.u32 %s136_s9, 4  ;;  %s16_s10 = int_to_ptr.vmem [resolvable:$true] %s15_s10 }
   0x4   :  { %s90_s11 = scalar_lea.vmem %s16_s10, 256  ;;  %p95_p1 = scmp.lt.s32.totalorder %s16_s10, %s16_s10 }
   0x5   :  { %p91_p0 = scmp.ne.s32.totalorder %s16_s10, %s90_s11  ;;  %p96_p2 = scmp.lt.s32.totalorder %s90_s11, %s90_s11 }
   0x7   :  { %p97_p3 = por %p96_p2, %p95_p1 }
   0x9   :  { %p98_p4 = pnand %p97_p3, %p91_p0 }
   0xb   :  { %101 = shalt.err (!%p98_p4)
}
   0xc   :  { %s137_s12 = smov 128   ;;  %s138_s13 = smov 8  }
   0xd   :  { %21 = dma.hbm_to_vmem [thread:$0]  %s165_s0, 256, %s16_s10, [#allocation3], %s137_s12, %s137_s12, %s138_s13  }
   0xe   :  { %s139_s16 = smov [#allocation5]  }
   0xf   :  { %s27_s17 = sshll.u32 %s139_s16, 4  ;;  %s28_s17 = int_to_ptr.vmem [resolvable:$true] %s27_s17 }
  0x10   :  { %s110_s18 = scalar_lea.vmem %s28_s17, 256  ;;  %p115_p6 = scmp.lt.s32.totalorder %s28_s17, %s28_s17 }
  0x11   :  { %p111_p5 = scmp.ne.s32.totalorder %s28_s17, %s110_s18  ;;  %p116_p7 = scmp.lt.s32.totalorder %s110_s18, %s110_s18 }
  0x13   :  { %p117_p8 = por %p116_p7, %p115_p6 }
  0x15   :  { %p118_p9 = pnand %p117_p8, %p111_p5 }
  0x17   :  { %121 = shalt.err (!%p118_p9)
}
  0x18   :  { %33 = dma.hbm_to_vmem [thread:$0]  %s166_s1, 256, %s28_s17, [#allocation6], %s137_s12, %s137_s12, %s138_s13  }
  0x19   :  { %130 = dma.done.wait [#allocation3], 256  }
  0x1a   :  { %131 = vsyncadd [#allocation3], 4294967040 }
  0x1b   :  { %132 = dma.done.wait [#allocation6], 256  }
  0x1c   :  { %133 = vsyncadd [#allocation6], 4294967040  ;;  %v40_v0 = vld [vmem:[#allocation2] sm:$0xff]  ;;  %v41_v1 = vld [vmem:[#allocation2 + $0x8] sm:$0xff]  ;;  %s140_s1 = smov [#allocation7]  }
  0x1d   :  { %v42_v2 = vld [vmem:[#allocation5] sm:$0xff]  ;;  %v43_v3 = vld [vmem:[#allocation5 + $0x8] sm:$0xff] }
  0x1e   :  { %v44_v4 = vsub.f32 %v40_v0, %v42_v2  ;;  %v45_v5 = vsub.f32 %v41_v1, %v43_v3 }
  0x20   :  { %v46_v6 = vand.u32 2147483647, %v44_v4  ;;  %v47_v7 = vand.u32 2147483647, %v45_v5 }
  0x22   :  { %v48_v8 = vadd.f32 %v47_v7, %v46_v6 }
  0x24   :  { %49 = vadd.xlane.f32.xlu0 %v48_v8 }
  0xad   :  { %v50_v9 = vpop.xlane.xlu0 %49 }
  0xae   :  { %v51_v10 = vrot.slane %v50_v9, 4 }
  0xb0   :  { %v52_v11 = vadd.f32 %v51_v10, %v50_v9 }
  0xb2   :  { %v53_v12 = vrot.slane %v52_v11, 2 }
  0xb4   :  { %v54_v13 = vadd.f32 %v53_v12, %v52_v11 }
  0xb6   :  { %v55_v14 = vrot.slane %v54_v13, 1 }
  0xb8   :  { %v56_v15 = vadd.f32 %v55_v14, %v54_v13 }
  0xba   :  { %75 = vpush %v56_v15 }
  0xeb   :  { %s76_s0 = spop %75 }
  0xec   :  { %59 = sst [smem:[#allocation7]] %s76_s0 }
  0xed   :  { %67 = dma.smem_to_hbm %s140_s1, 16, %s167_s2, [#allocation4]  }
  0xee   :  { %134 = dma.done.wait [#allocation4], 16  }
  0xef   :  { %135 = vsyncadd [#allocation4], 4294967280 }
  0xf0   :  { %71 = sfence }
  0xf1   :  { %72 = vsyncpa [#allocation3], 1 }
  0xf2   :  { %73 = vsyncpa [#allocation6], 1 }
  0xf3   :  { %74 = vsyncpa [#allocation4], 1 }

</bundles_post_ra>
